<compile_context>
chip_gen: v7x
topology: tpu7x:2x2x1
jax: 0.10.0
libtpu: 0.0.40
codegen_flags: <defaults>
</compile_context>

<pallas_src>
import functools

import jax
import jax.numpy as jnp
import numpy as np
from jax.experimental import pallas as pl
from jax.experimental.pallas import tpu as pltpu


def _round_up(x, m):
    return ((x + m - 1) // m) * m


def _pick_tm(m, target=512):
    """Largest multiple-of-8 divisor of m that is <= target and leaves >= 2
    grid tiles (so v7x's second TensorCore gets work); fall back to m."""
    best = None
    d = 8
    limit = min(target, m // 2)
    while d <= limit:
        if m % d == 0:
            best = d
        d += 8
    return best if best is not None else m


# ---------------------------------------------------------------------------
# Kernel 1: single-K-step fused conv matmul   relu(X @ W) * scale + shift
#   (magical_conv_block order is Conv -> ReLU -> BatchNorm, BN folded to affine)
# ---------------------------------------------------------------------------
def _conv_mm_kernel(x_ref, w_ref, s_ref, t_ref, o_ref):
    acc = jnp.dot(x_ref[...], w_ref[...], preferred_element_type=jnp.float32)
    acc = jnp.maximum(acc, 0.0)
    acc = acc * s_ref[...] + t_ref[...]
    o_ref[...] = acc.astype(o_ref.dtype)


def conv_bn_relu_matmul(cols, w_p, scale_p, shift_p, *, tm):
    """cols: (M, Kp) bf16, w_p: (Kp, Np) bf16  ->  (M, Np) bf16."""
    M, Kp = cols.shape
    Np = w_p.shape[1]
    assert M % tm == 0 and Kp % 128 == 0 and Np % 128 == 0
    return pl.pallas_call(
        _conv_mm_kernel,
        out_shape=jax.ShapeDtypeStruct((M, Np), jnp.bfloat16),
        grid=(M // tm,),
        in_specs=[
            pl.BlockSpec((tm, Kp), lambda i: (i, 0)),
            pl.BlockSpec((Kp, Np), lambda i: (0, 0)),
            pl.BlockSpec((1, Np), lambda i: (0, 0)),
            pl.BlockSpec((1, Np), lambda i: (0, 0)),
        ],
        out_specs=pl.BlockSpec((tm, Np), lambda i: (i, 0)),
        compiler_params=pltpu.CompilerParams(
            dimension_semantics=("parallel",)),
    )(cols, w_p, scale_p, shift_p)


# ---------------------------------------------------------------------------
# Kernel 2: fused CNN tail  conv4 -> conv5 -> Flatten -> fc1 -> ReLU -> fc2
#   conv4/conv5 window gathers are absorbed into dense pre-packed weights,
#   so the whole chain is 4 matmuls with all intermediates in VMEM.
# ---------------------------------------------------------------------------
def _tail_kernel(x_ref, w4_ref, s4_ref, t4_ref, w5_ref, s5_ref, t5_ref,
                 w1_ref, b1_ref, w2_ref, b2_ref, o_ref):
    # conv4: relu(x @ W4_big) * s4 + t4          (NHWC-flattened 2x2 output)
    h4 = jnp.dot(x_ref[...], w4_ref[...], preferred_element_type=jnp.float32)
    h4 = jnp.maximum(h4, 0.0) * s4_ref[...] + t4_ref[...]
    # conv5: relu(h4 @ W5_eff) * s5 + t5         (1x1 output == channel vector)
    h5 = jnp.dot(h4.astype(jnp.bfloat16), w5_ref[...],
                 preferred_element_type=jnp.float32)
    h5 = jnp.maximum(h5, 0.0) * s5_ref[...] + t5_ref[...]
    # fc1 -> ReLU -> fc2
    h6 = jnp.dot(h5.astype(jnp.bfloat16), w1_ref[...],
                 preferred_element_type=jnp.float32) + b1_ref[...]
    h6 = jnp.maximum(h6, 0.0)
    out = jnp.dot(h6.astype(jnp.bfloat16), w2_ref[...],
                  preferred_element_type=jnp.float32) + b2_ref[...]
    o_ref[...] = out.astype(o_ref.dtype)


def tail_mlp(x3, p):
    """x3: (N, H3*W3*C3) bf16 NHWC-flattened conv3 output -> (N, rep_dim) f32."""
    M, _ = x3.shape
    Mp = _round_up(M, 8)
    xp = jnp.pad(x3, ((0, Mp - M), (0, 0)))
    ops = [xp, p["w4"], p["s4"], p["t4"], p["w5"], p["s5"], p["t5"],
           p["fc1_w"], p["fc1_b"], p["fc2_w"], p["fc2_b"]]
    Rp = p["fc2_w"].shape[1]
    out = pl.pallas_call(
        _tail_kernel,
        out_shape=jax.ShapeDtypeStruct((Mp, Rp), jnp.float32),
        grid=(1,),
        in_specs=[pl.BlockSpec(o.shape, lambda i: (0, 0)) for o in ops],
        out_specs=pl.BlockSpec((Mp, Rp), lambda i: (0, 0)),
        compiler_params=pltpu.CompilerParams(
            dimension_semantics=("arbitrary",)),
    )(*ops)
    return out[:M, :p["rep_dim"]]


# ---------------------------------------------------------------------------
# Kernel 3: 2-layer LSTM (PyTorch nn.LSTM, h0=c0=0) + fused mean projection.
#   * layer-0 input projection hoisted out of the recurrence (one big matmul)
#   * gates lane-padded to 128 lanes each -> lane-aligned slices / stores
#   * bf16 MXU operands, f32 state carried in registers via fori_loop
# ---------------------------------------------------------------------------
def _lstm_mean_kernel(x_ref, wih0_ref, whh0_ref, b0_ref, wih1_ref, whh1_ref,
                      b1_ref, wm_ref, bm_ref, o_ref, gx_ref, *, bp, seq_len):
    HG = 128  # lane-padded hidden per gate

    # Hoisted layer-0 input projection for ALL timesteps (perf review item 1).
    gx_ref[...] = (jnp.dot(x_ref[...], wih0_ref[...],
                           preferred_element_type=jnp.float32) + b0_ref[...])

    def sigmoid(v):
        return pl.reciprocal(1.0 + jnp.exp(-v), approx=True)

    def gate_act(gates, c_prev):
        i = sigmoid(gates[:, 0:HG])
        f = sigmoid(gates[:, HG:2 * HG])
        g = jnp.tanh(gates[:, 2 * HG:3 * HG])
        o = sigmoid(gates[:, 3 * HG:4 * HG])
        c_new = f * c_prev + i * g
        h_new = o * jnp.tanh(c_new)
        return h_new, c_new

    def step(t, carry):
        h0, c0, h1, c1 = carry
        row = pl.multiple_of(t * bp, bp)
        gx_t = gx_ref[pl.ds(row, bp), :]
        # layer 0: only the recurrent matmul stays on the serial path
        g0 = gx_t + jnp.dot(h0.astype(jnp.bfloat16), whh0_ref[...],
                            preferred_element_type=jnp.float32)
        h0, c0 = gate_act(g0, c0)
        # layer 1
        g1 = (jnp.dot(h0.astype(jnp.bfloat16), wih1_ref[...],
                      preferred_element_type=jnp.float32)
              + jnp.dot(h1.astype(jnp.bfloat16), whh1_ref[...],
                        preferred_element_type=jnp.float32)
              + b1_ref[...])
        h1, c1 = gate_act(g1, c1)
        # fused mean_layer projection (row-wise linear commutes with masking)
        proj = (jnp.dot(h1.astype(jnp.bfloat16), wm_ref[...],
                        preferred_element_type=jnp.float32) + bm_ref[...])
        o_ref[t] = proj.astype(o_ref.dtype)
        return (h0, c0, h1, c1)

    z = jnp.zeros((bp, HG), jnp.float32)
    jax.lax.fori_loop(0, seq_len, step, (z, z, z, z))


def lstm2_mean(stacked, p):
    """stacked: (num_traj, T, D) -> mean-projected hiddens (num_traj, T, 128)."""
    B, T, D = stacked.shape
    Bp = _round_up(B, 8)
    Dp = 128
    assert D <= Dp
    x = jnp.transpose(stacked, (1, 0, 2))                        # (T, B, D)
    x = jnp.pad(x, ((0, 0), (0, Bp - B), (0, Dp - D))).astype(jnp.bfloat16)
    x = x.reshape(T * Bp, Dp)

    kernel = functools.partial(_lstm_mean_kernel, bp=Bp, seq_len=T)
    out = pl.pallas_call(
        kernel,
        out_shape=jax.ShapeDtypeStruct((T, Bp, 128), jnp.float32),
        grid=(1,),
        in_specs=[
            pl.BlockSpec((T * Bp, Dp), lambda i: (0, 0)),
            pl.BlockSpec(p["wih0"].shape, lambda i: (0, 0)),
            pl.BlockSpec(p["whh0"].shape, lambda i: (0, 0)),
            pl.BlockSpec(p["b0"].shape, lambda i: (0, 0)),
            pl.BlockSpec(p["wih1"].shape, lambda i: (0, 0)),
            pl.BlockSpec(p["whh1"].shape, lambda i: (0, 0)),
            pl.BlockSpec(p["b1"].shape, lambda i: (0, 0)),
            pl.BlockSpec(p["wm"].shape, lambda i: (0, 0)),
            pl.BlockSpec(p["bm"].shape, lambda i: (0, 0)),
        ],
        out_specs=pl.BlockSpec((T, Bp, 128), lambda i: (0, 0, 0)),
        scratch_shapes=[pltpu.VMEM((T * Bp, 4 * 128), jnp.float32)],
        compiler_params=pltpu.CompilerParams(
            dimension_semantics=("arbitrary",)),
    )(x, p["wih0"], p["whh0"], p["b0"], p["wih1"], p["whh1"], p["b1"],
      p["wm"], p["bm"])
    return jnp.transpose(out, (1, 0, 2))[:B]                     # (B, T, 128)


# ---------------------------------------------------------------------------
# Conv glue: NHWC im2col (pure data movement, bf16) for conv1-conv3
# ---------------------------------------------------------------------------
def im2col_nhwc(x, k, stride, padding):
    """x: (N, H, W, C) -> (N*Ho*Wo, k*k*C), feature order (kh, kw, c)."""
    N, H, W, C = x.shape
    xp = jnp.pad(x, ((0, 0), (padding, padding), (padding, padding), (0, 0)))
    Ho = (H + 2 * padding - k) // stride + 1
    Wo = (W + 2 * padding - k) // stride + 1
    cols = []
    for i in range(k):
        for j in range(k):
            cols.append(xp[:, i:i + stride * Ho:stride, j:j + stride * Wo:stride, :])
    cols = jnp.stack(cols, axis=3)                                # (N, Ho, Wo, k*k, C)
    return cols.reshape(N * Ho * Wo, k * k * C), Ho, Wo


# ---------------------------------------------------------------------------
# Host-side trajectory grouping (mirrors RecurrentEncoder._reshape_and_stack;
# trajectories padded only to max length -> shorter LSTM trip count, outputs
# identical after masking)
# ---------------------------------------------------------------------------
def reshape_and_stack(z, trajectory_id, timesteps, min_traj_size=5):
    trajectory_id = np.asarray(trajectory_id)
    timesteps = np.asarray(timesteps)
    assert z.shape[0] == trajectory_id.shape[0]
    groups, lengths = [], []
    for tid in np.unique(trajectory_id):
        idx = np.nonzero(trajectory_id == tid)[0]
        ts = timesteps[idx]
        assert list(ts) == sorted(list(ts)), "Batches must be sorted"
        groups.append(idx)
        lengths.append(int(idx.shape[0]))
    assert np.mean(lengths) > min_traj_size
    T = max(lengths)
    padded = []
    for idx in groups:
        traj_z = z[idx]
        pad = jnp.zeros((T - idx.shape[0], z.shape[1]), z.dtype)
        padded.append(jnp.concatenate([traj_z, pad], axis=0))
    return jnp.stack(padded, axis=0), lengths


# ---------------------------------------------------------------------------
# MAGICALCNN ('MAGICALCNN' arch, width = 2) raw params + one-time packing
# ---------------------------------------------------------------------------
ARCH = [
    dict(out_dim=32, kernel_size=5, stride=1, padding=2),
    dict(out_dim=64, kernel_size=3, stride=2, padding=1),
    dict(out_dim=64, kernel_size=3, stride=2, padding=1),
    dict(out_dim=64, kernel_size=3, stride=2, padding=1),
    dict(out_dim=64, kernel_size=3, stride=2, padding=1),
]
WIDTH = 2  # non-resnet arch => width multiplier 2


def init_raw_params(key, in_channels, single_frame_repr_dim, representation_dim,
                    rnn_hidden, spatial):
    """Deterministic synthetic parameters in PyTorch layout."""
    conv_params = []
    c_in, h = in_channels, spatial
    for spec in ARCH:
        c_out = spec["out_dim"] * WIDTH
        k, s, p = spec["kernel_size"], spec["stride"], spec["padding"]
        key, k1, k2, k3, k4, k5 = jax.random.split(key, 6)
        conv_params.append(dict(
            w=jax.random.normal(k1, (c_out, c_in, k, k), jnp.float32) * 0.05,
            gamma=1.0 + 0.1 * jax.random.normal(k2, (c_out,), jnp.float32),
            beta=0.1 * jax.random.normal(k3, (c_out,), jnp.float32),
            mean=0.05 * jax.random.normal(k4, (c_out,), jnp.float32),
            var=1.0 + 0.1 * jax.random.uniform(k5, (c_out,), jnp.float32),
        ))
        c_in = c_out
        h = (h + 2 * p - k) // s + 1
    fc_in = c_in * h * h
    hidden = 128 * WIDTH
    key, k1, k2, k3, k4 = jax.random.split(key, 5)
    fc1_w = jax.random.normal(k1, (hidden, fc_in), jnp.float32) * 0.05
    fc1_b = 0.05 * jax.random.normal(k2, (hidden,), jnp.float32)
    fc2_w = jax.random.normal(k3, (single_frame_repr_dim, hidden), jnp.float32) * 0.05
    fc2_b = 0.05 * jax.random.normal(k4, (single_frame_repr_dim,), jnp.float32)

    lstm = {}
    in_dims = [single_frame_repr_dim, rnn_hidden]
    for layer in range(2):
        key, a, b_, c, d = jax.random.split(key, 5)
        lstm[f"w_ih{layer}"] = jax.random.normal(a, (4 * rnn_hidden, in_dims[layer]), jnp.float32) * 0.05
        lstm[f"w_hh{layer}"] = jax.random.normal(b_, (4 * rnn_hidden, rnn_hidden), jnp.float32) * 0.05
        lstm[f"b_ih{layer}"] = 0.05 * jax.random.normal(c, (4 * rnn_hidden,), jnp.float32)
        lstm[f"b_hh{layer}"] = 0.05 * jax.random.normal(d, (4 * rnn_hidden,), jnp.float32)

    key, m1, m2 = jax.random.split(key, 3)
    mean_w = jax.random.normal(m1, (representation_dim, rnn_hidden), jnp.float32) * 0.05
    mean_b = 0.05 * jax.random.normal(m2, (representation_dim,), jnp.float32)

    return dict(conv=conv_params, fc1_w=fc1_w, fc1_b=fc1_b, fc2_w=fc2_w,
                fc2_b=fc2_b, lstm=lstm, mean_w=mean_w, mean_b=mean_b)


def pack_params(raw, in_channels, spatial, rep_dim, rnn_hidden, eps=1e-5):
    """One-time weight packing: padded / transposed / bf16, done outside the
    forward so no per-call pad/transpose traffic remains."""
    p = {"rep_dim": rep_dim}

    sizes = [spatial]
    for spec in ARCH:
        k, s, pad = spec["kernel_size"], spec["stride"], spec["padding"]
        sizes.append((sizes[-1] + 2 * pad - k) // s + 1)
    assert sizes[5] == 1 and sizes[4] == 2 and sizes[3] >= 2, \
        "tail fusion assumes conv3->4x4-ish, conv4->2x2, conv5->1x1 maps"

    def bn_scale_shift(layer):
        inv = 1.0 / np.sqrt(np.asarray(layer["var"], np.float32) + eps)
        scale = np.asarray(layer["gamma"], np.float32) * inv
        shift = (np.asarray(layer["beta"], np.float32)
                 - np.asarray(layer["mean"], np.float32) * scale)
        return scale, shift

    # conv1-3: im2col matmul weights, rows ordered (kh, kw, cin); K/N -> x128
    for li in range(3):
        layer = raw["conv"][li]
        w = np.asarray(layer["w"], np.float32)            # (cout, cin, k, k)
        cout, cin, k, _ = w.shape
        wm = w.transpose(2, 3, 1, 0).reshape(k * k * cin, cout)
        Kp, Np = _round_up(k * k * cin, 128), _round_up(cout, 128)
        wmp = np.zeros((Kp, Np), np.float32)
        wmp[:k * k * cin, :cout] = wm
        scale, shift = bn_scale_shift(layer)
        sp = np.zeros((1, Np), np.float32); sp[0, :cout] = scale
        tp = np.zeros((1, Np), np.float32); tp[0, :cout] = shift
        p[f"c{li + 1}_w"] = jnp.asarray(wmp, jnp.bfloat16)
        p[f"c{li + 1}_s"] = jnp.asarray(sp)
        p[f"c{li + 1}_t"] = jnp.asarray(tp)
        p[f"c{li + 1}_cout"] = cout

    # conv4 (3x3 s2 p1 on the H3xH3 map) absorbed into one dense weight:
    # x3_flat (N, H3*H3*C3) @ w4_big -> NHWC-flattened 2x2xC4 output
    H3, H4 = sizes[3], sizes[4]
    w4 = np.asarray(raw["conv"][3]["w"], np.float32)      # (C4, C3, 3, 3)
    C4, C3 = w4.shape[0], w4.shape[1]
    w4_big = np.zeros((H3 * H3 * C3, H4 * H4 * C4), np.float32)
    for ho in range(H4):
        for wo in range(H4):
            for dh in range(3):
                for dw in range(3):
                    hi, wi = 2 * ho - 1 + dh, 2 * wo - 1 + dw
                    if 0 <= hi < H3 and 0 <= wi < H3:
                        r0 = (hi * H3 + wi) * C3
                        c0 = (ho * H4 + wo) * C4
                        w4_big[r0:r0 + C3, c0:c0 + C4] = w4[:, :, dh, dw].T
    s4, t4 = bn_scale_shift(raw["conv"][3])
    p["w4"] = jnp.asarray(w4_big, jnp.bfloat16)
    p["s4"] = jnp.asarray(np.tile(s4, H4 * H4).reshape(1, -1))
    p["t4"] = jnp.asarray(np.tile(t4, H4 * H4).reshape(1, -1))

    # conv5 (3x3 s2 p1 on the 2x2 map -> single 1x1 output; only 4 valid taps)
    w5 = np.asarray(raw["conv"][4]["w"], np.float32)      # (C5, C4, 3, 3)
    C5 = w5.shape[0]
    w5_eff = np.zeros((H4 * H4 * C4, C5), np.float32)
    for i in range(H4):
        for j in range(H4):
            r0 = (i * H4 + j) * C4
            w5_eff[r0:r0 + C4, :] = w5[:, :, i + 1, j + 1].T
    s5, t5 = bn_scale_shift(raw["conv"][4])
    p["w5"] = jnp.asarray(w5_eff, jnp.bfloat16)
    p["s5"] = jnp.asarray(s5.reshape(1, -1))
    p["t5"] = jnp.asarray(t5.reshape(1, -1))

    # fc tail (final spatial is 1x1 -> NCHW/NHWC flatten orders coincide)
    fc1_w = np.asarray(raw["fc1_w"], np.float32)          # (256, fc_in)
    fc2_w = np.asarray(raw["fc2_w"], np.float32)          # (rep, 256)
    hid = fc1_w.shape[0]
    assert fc1_w.shape[1] == C5
    Rp = _round_up(rep_dim, 128)
    p["fc1_w"] = jnp.asarray(fc1_w.T, jnp.bfloat16)
    p["fc1_b"] = jnp.asarray(np.asarray(raw["fc1_b"], np.float32).reshape(1, -1))
    w2p = np.zeros((hid, Rp), np.float32); w2p[:, :rep_dim] = fc2_w.T
    b2p = np.zeros((1, Rp), np.float32); b2p[0, :rep_dim] = np.asarray(raw["fc2_b"], np.float32)
    p["fc2_w"] = jnp.asarray(w2p, jnp.bfloat16)
    p["fc2_b"] = jnp.asarray(b2p)

    # LSTM + mean projection: each gate padded to its own 128-lane tile,
    # input/hidden rows padded to 128 (padded lanes provably stay zero in h/c)
    HG, H, Dp = 128, rnn_hidden, 128
    assert H <= HG and rep_dim <= Dp

    def gate_cols(w_t):                                   # (in, 4H) -> (in, 4*HG)
        out = np.zeros((w_t.shape[0], 4 * HG), np.float32)
        for g in range(4):
            out[:, g * HG:g * HG + H] = w_t[:, g * H:(g + 1) * H]
        return out

    def pad_rows(w, rp):
        out = np.zeros((rp, w.shape[1]), np.float32)
        out[:w.shape[0]] = w
        return out

    l = raw["lstm"]
    p["wih0"] = jnp.asarray(pad_rows(gate_cols(np.asarray(l["w_ih0"], np.float32).T), Dp), jnp.bfloat16)
    p["whh0"] = jnp.asarray(pad_rows(gate_cols(np.asarray(l["w_hh0"], np.float32).T), HG), jnp.bfloat16)
    p["b0"] = jnp.asarray(gate_cols((np.asarray(l["b_ih0"], np.float32)
                                     + np.asarray(l["b_hh0"], np.float32)).reshape(1, -1)))
    p["wih1"] = jnp.asarray(pad_rows(gate_cols(np.asarray(l["w_ih1"], np.float32).T), HG), jnp.bfloat16)
    p["whh1"] = jnp.asarray(pad_rows(gate_cols(np.asarray(l["w_hh1"], np.float32).T), HG), jnp.bfloat16)
    p["b1"] = jnp.asarray(gate_cols((np.asarray(l["b_ih1"], np.float32)
                                     + np.asarray(l["b_hh1"], np.float32)).reshape(1, -1)))
    wm = np.zeros((HG, 128), np.float32)
    wm[:H, :rep_dim] = np.asarray(raw["mean_w"], np.float32).T
    bm = np.zeros((1, 128), np.float32)
    bm[0, :rep_dim] = np.asarray(raw["mean_b"], np.float32)
    p["wm"] = jnp.asarray(wm, jnp.bfloat16)
    p["bm"] = jnp.asarray(bm)
    return p


# ---------------------------------------------------------------------------
# RecurrentEncoder.forward
# ---------------------------------------------------------------------------
def recurrent_encoder_forward(p, x, traj_info, min_traj_size=5):
    """-> (mean, stddev) of the independent multivariate normal
    (stddev = ones since learn_scale=False)."""
    trajectory_id, timesteps = traj_info
    # TODO(synk): warn_on_non_image_tensor is host-side warning glue; omitted.
    N = x.shape[0]
    rep_dim = p["rep_dim"]

    # -- single_frame_encoder (MAGICALCNN): NHWC + bf16 end-to-end --
    h = jnp.transpose(x, (0, 2, 3, 1)).astype(jnp.bfloat16)       # cast once

    for li in range(3):                                            # conv1-conv3
        spec = ARCH[li]
        cols, Ho, Wo = im2col_nhwc(h, spec["kernel_size"], spec["stride"],
                                   spec["padding"])
        wk = p[f"c{li + 1}_w"]
        cols = jnp.pad(cols, ((0, 0), (0, wk.shape[0] - cols.shape[1])))
        tm = _pick_tm(cols.shape[0])
        a = conv_bn_relu_matmul(cols, wk, p[f"c{li + 1}_s"], p[f"c{li + 1}_t"],
                                tm=tm)
        h = a.reshape(N, Ho, Wo, a.shape[1])[..., :p[f"c{li + 1}_cout"]]

    # fused conv4 + conv5 + fc1 + fc2 (all intermediates VMEM-resident)
    x3 = h.reshape(N, -1)                                          # NHWC flatten
    z = tail_mlp(x3, p)                                            # (N, rep_dim)

    # -- _reshape_and_stack + context_rnn (2-layer LSTM) + mean_layer --
    stacked, lengths = reshape_and_stack(z, trajectory_id, timesteps,
                                         min_traj_size)
    proj = lstm2_mean(stacked, p)                                  # (n_traj, T, 128)
    mean = jnp.concatenate([proj[i, :length] for i, length in enumerate(lengths)],
                           axis=0)[:, :rep_dim]
    stddev = jnp.ones((mean.shape[0], rep_dim), mean.dtype)        # learn_scale=False
    return mean, stddev


if __name__ == "__main__":
    channels, spatial = 4, 16
    rep_dim = 32          # representation_dim (single_frame_repr_dim defaults to it)
    rnn_hidden = 64       # rnn_output_dim default
    traj_lengths = [8, 6]                     # mean length 7 > min_traj_size (5)
    batch = sum(traj_lengths)                 # 14 frames total
    trajectory_id = np.concatenate([np.full(l, i, np.int32)
                                    for i, l in enumerate(traj_lengths)])
    timesteps = np.concatenate([np.arange(l, dtype=np.int32) for l in traj_lengths])

    key = jax.random.PRNGKey(0)
    pkey, xkey = jax.random.split(key)
    raw = init_raw_params(pkey, channels, rep_dim, rep_dim, rnn_hidden, spatial)
    packed = pack_params(raw, in_channels=channels, spatial=spatial,
                         rep_dim=rep_dim, rnn_hidden=rnn_hidden)
    # images in [0, 1], NCHW, as expected by the module
    x = jax.random.uniform(xkey, (batch, channels, spatial, spatial), jnp.float32)

    mean, stddev = recurrent_encoder_forward(packed, x,
                                             (trajectory_id, timesteps))
    jax.block_until_ready((mean, stddev))

    assert mean.shape == (batch, rep_dim), mean.shape
    assert stddev.shape == (batch, rep_dim), stddev.shape
    assert bool(jnp.all(jnp.isfinite(mean)))
    assert bool(jnp.all(stddev == 1.0))
    print("KERNEL_OK")
</pallas_src>

<mosaic_0001>
module attributes {stable_mosaic.version = 11 : i64} {
  func.func @_conv_mm_kernel(%arg0: i32, %arg1: memref<512x128xbf16, #tpu.memory_space<vmem>>, %arg2: memref<128x128xbf16, #tpu.memory_space<vmem>>, %arg3: memref<1x128xf32, #tpu.memory_space<vmem>>, %arg4: memref<1x128xf32, #tpu.memory_space<vmem>>, %arg5: memref<512x128xbf16, #tpu.memory_space<vmem>>) attributes {dimension_semantics = [#tpu.dimension_semantics<parallel>], iteration_bounds = array<i64: 7>, scalar_prefetch = 0 : i64, scratch_operands = 0 : i64, tpu.core_type = #tpu.core_type<tc>, window_params = [{transform_indices = @transform_0, window_bounds = array<i64: 512, 128>}, {pipeline_mode = #tpu.pipeline_mode<synchronous>, transform_indices = @transform_1, window_bounds = array<i64: 128, 128>}, {pipeline_mode = #tpu.pipeline_mode<synchronous>, transform_indices = @transform_2, window_bounds = array<i64: 1, 128>}, {pipeline_mode = #tpu.pipeline_mode<synchronous>, transform_indices = @transform_3, window_bounds = array<i64: 1, 128>}, {transform_indices = @transform_4, window_bounds = array<i64: 512, 128>}]} {
    %c0 = arith.constant 0 : index
    %c0_0 = arith.constant 0 : index
    %0 = vector.load %arg1[%c0, %c0_0] : memref<512x128xbf16, #tpu.memory_space<vmem>>, vector<512x128xbf16>
    %c0_1 = arith.constant 0 : index
    %c0_2 = arith.constant 0 : index
    %1 = vector.load %arg2[%c0_1, %c0_2] : memref<128x128xbf16, #tpu.memory_space<vmem>>, vector<128x128xbf16>
    %cst = arith.constant dense<0.000000e+00> : vector<512x128xf32>
    %2 = tpu.matmul %0, %1, %cst {dimension_numbers = #tpu.dot_dimension_numbers<[1], [0], [0], [1], [0, 0, 1, 1], [], []>} : vector<512x128xbf16>, vector<128x128xbf16>, vector<512x128xf32> -> vector<512x128xf32>
    %cst_3 = arith.constant 0.000000e+00 : f32
    %3 = vector.broadcast %cst_3 : f32 to vector<512x128xf32>
    %4 = arith.maximumf %2, %3 : vector<512x128xf32>
    %c0_4 = arith.constant 0 : index
    %c0_5 = arith.constant 0 : index
    %5 = vector.load %arg3[%c0_4, %c0_5] : memref<1x128xf32, #tpu.memory_space<vmem>>, vector<1x128xf32>
    %6 = vector.broadcast %5 : vector<1x128xf32> to vector<512x128xf32>
    %7 = arith.mulf %4, %6 : vector<512x128xf32>
    %c0_6 = arith.constant 0 : index
    %c0_7 = arith.constant 0 : index
    %8 = vector.load %arg4[%c0_6, %c0_7] : memref<1x128xf32, #tpu.memory_space<vmem>>, vector<1x128xf32>
    %9 = vector.broadcast %8 : vector<1x128xf32> to vector<512x128xf32>
    %10 = arith.addf %7, %9 : vector<512x128xf32>
    %11 = arith.truncf %10 : vector<512x128xf32> to vector<512x128xbf16>
    %c0_8 = arith.constant 0 : index
    %c0_9 = arith.constant 0 : index
    %12 = vector.load %arg5[%c0_8, %c0_9] : memref<512x128xbf16, #tpu.memory_space<vmem>>, vector<512x128xbf16>
    tpu.vector_store %arg5[%c0_8, %c0_9], %11 {strides = array<i32>} : memref<512x128xbf16, #tpu.memory_space<vmem>>, vector<512x128xbf16>,
    return
  }
  func.func @transform_0(%arg0: i32) -> (i32, i32) {
    %c0_i32 = arith.constant 0 : i32
    %c0_i32_0 = arith.constant 0 : i32
    return %arg0, %c0_i32 : i32, i32
  }
  func.func @transform_1(%arg0: i32) -> (i32, i32) {
    %c0_i32 = arith.constant 0 : i32
    %c0_i32_0 = arith.constant 0 : i32
    %c0_i32_1 = arith.constant 0 : i32
    return %c0_i32, %c0_i32_0 : i32, i32
  }
  func.func @transform_2(%arg0: i32) -> (i32, i32) {
    %c0_i32 = arith.constant 0 : i32
    %c0_i32_0 = arith.constant 0 : i32
    %c0_i32_1 = arith.constant 0 : i32
    return %c0_i32, %c0_i32_0 : i32, i32
  }
  func.func @transform_3(%arg0: i32) -> (i32, i32) {
    %c0_i32 = arith.constant 0 : i32
    %c0_i32_0 = arith.constant 0 : i32
    %c0_i32_1 = arith.constant 0 : i32
    return %c0_i32, %c0_i32_0 : i32, i32
  }
  func.func @transform_4(%arg0: i32) -> (i32, i32) {
    %c0_i32 = arith.constant 0 : i32
    %c0_i32_0 = arith.constant 0 : i32
    return %arg0, %c0_i32 : i32, i32
  }
}

</mosaic_0001>

<bundles_post_ra>
// kernel: tpu_custom_call.1
= control target key start
LH: loop header
LB: loop body
LE: loop exit
PB: predicated region body
PF: predicated region fallthrough
CT: control target
= control target key end

     0   :  { %9 = vsyncpa [#allocation3], 0  ;;  %s2653_s0 = inlined_call_operand.hbm [shape: bf16[3584,128], index: 0, kind: input, shape index: {}]   ;;  %s2654_s1 = inlined_call_operand.hbm [shape: bf16[128,128], index: 1, kind: input, shape index: {}]   ;;  %s2655_s2 = inlined_call_operand.vmem [shape: f32[1,128], index: 2, kind: input, shape index: {}]   ;;  %s2656_s3 = inlined_call_operand.vmem [shape: f32[1,128], index: 3, kind: input, shape index: {}]   ;;  %s2657_s4 = inlined_call_operand.hbm [shape: bf16[3584,128], index: 4, kind: output, shape index: {}]  }
   0x1   :  { %11 = vsyncpa [#allocation3 + $0x1], 0 }
   0x2   :  { %12 = vsyncpa [#allocation6], 0 }
   0x3   :  { %13 = vsyncpa [#allocation4], 0 }
   0x4   :  { %15 = vsyncpa [#allocation4 + $0x1], 0  ;;  %s2244_s15 = smov 0   ;;  %s2246_s16 = smov 0  }
   0x5   :  { %s2248_s17 = smov 0   ;;  %s2250_s18 = smov 0  }
   0x6 LB: > { %s2265_s19 = sadd.s32 4294967295, %s2210_s18   ;;  %s1466_s20 = sadd.s32 4294967294, %s2210_s18   ;;  %s2210_s18 = sphi %s2250_s18, %s2676_s18   ;;  %s2206_s17 = sphi %s2248_s17, %s2675_s17   ;;  %s2202_s16 = sphi %s2246_s16, %s2674_s16   ;;  %s2198_s15 = sphi %s2244_s15, %s2673_s15  }
   0x7   : > { %p41_p0 = scmp.ne.s32.totalorder %s2202_s16, %s2198_s15  ;;  %p2658_p1 = scmp.eq.s32.totalorder %s2265_s19, 0 }
   0x8   : > { %p134_p3 = scmp.eq.s32.totalorder %s1466_s20, 6  ;;  %p1467_p5 = scmp.ge.s32.totalorder %s2210_s18, 1 }
   0x9   : > { %p2274_p4 = por %p2658_p1, %p41_p0  ;;  %p141_p7 = scmp.lt.s32.totalorder %s2210_s18, 8 }
   0xa   : > { %p2279_p6 = por %p134_p3, %p41_p0  ;;  %s2212_s24 = smov [#allocation5]  }
   0xb   : > { %s2661_s21 = scalar_select %p2274_p4, 1, 0 }
   0xc   : > { %s2662_s22 = scalar_select %p2279_p6, 1, 0 }
   0xd   : > { %p2284_p8 = pnand %p1467_p5, %p141_p7  ;;  %s153_s25 = sshll.u32 %s2212_s24, 4  ;;  %s154_s25 = int_to_ptr.vmem [resolvable:$true] %s153_s25 }
   0xe   : > { %s2297_s27 = sadd.s32 1, %s2210_s18   ;;  %s28_s28 = sadd.s32 1, %s2206_s17 }
   0xf   : > { %s2663_s23 = scalar_select %p2284_p8, 1, 0 }
  0x10   : > { %p1989_p9 = pneg %p2284_p8  ;;  %s25_s29 = ssub.s32 %s2210_s18, %s2297_s27 }
  0x11   : > { %s2082_s6 = scalar_lea.hbm %s2654_s1, 1024 }
  0x12   : > { %p2292_p10 = pnand %p1989_p9, %p2658_p1  ;;  %p2083_p11 = scmp.ne.s32.totalorder %s2654_s1, %s2082_s6 }
  0x13   : > { %p2089_p3 = scmp.lt.u32.totalorder %s2082_s6, %s2654_s1 }
  0x14   : > { %p2084_p12 = pneg %p2292_p10 }
  0x16   : > { %p2085_p13 = pnand %p2084_p12, %p2083_p11 }
  0x18   : > { %p2086_p0 = pneg %p2085_p13 }
  0x1a   : > { %p2091_p5 = pnand %p2089_p3, %p2086_p0 }
  0x1c   : > { %2094 = shalt.err (!%p2091_p5)
}
  0x1d   : > { %s2095_s11 = scalar_lea.vmem %s154_s25, 1024  ;;  %p2103_p2 = scmp.lt.s32.totalorder %s154_s25, %s154_s25 }
  0x1e   : > { %p2096_p7 = scmp.ne.s32.totalorder %s154_s25, %s2095_s11  ;;  %p2104_p6 = scmp.lt.s32.totalorder %s2095_s11, %s2095_s11 }
  0x20   : > { %p2098_p9 = pnand %p2096_p7, %p2084_p12  ;;  %p2105_p4 = por %p2104_p6, %p2103_p2 }
  0x22   : > { %p2099_p1 = pneg %p2098_p9 }
  0x24   : > { %p2106_p8 = pnand %p2105_p4, %p2099_p1 }
  0x26   : > { %2109 = shalt.err (!%p2106_p8)
}
  0x27   : > { %s2213_s12 = smov 64   ;;  %s2214_s13 = smov 4  }
  0x28   : > { %1992 = dma.hbm_to_vmem [thread:$0]  (!%p2292_p10), %s2654_s1, 1024, %s154_s25, [#allocation6], %s2213_s12, %s2213_s12, %s2214_s13  }
  0x29   : > { %p26_p1 = scmp.eq.s32.totalorder %s25_s29, 0  ;;  %p35_p2 = scmp.ne.s32.totalorder %s2206_s17, %s2202_s16 }
  0x2a   : > { %p36_p4 = scmp.eq.s32.totalorder %s2210_s18, 0  ;;  %p2002_p6 = scmp.lt.s32.totalorder %s2210_s18, 7 }
  0x2b   : > { %s2326_s24 = scalar_select %p26_p1, %s2206_s17, %s28_s28  }
  0x2c   : > { %p37_p8 = por %p36_p4, %p35_p2  ;;  %p2665_p11 = scmp.eq.s32.totalorder %s2265_s19, 6 }
  0x2d   : > { %s173_s26 = sand.u32 1, %s2206_s17   ;;  %s1588_s5 = sshll.u32 %s2210_s18, 12 }
  0x2e   : > { %p2330_p12 = por %p2665_p11, %p35_p2  ;;  %s1470_s6 = sshll.u32 %s173_s26, 8 }
  0x2f   : > { %s2339_s9 = scalar_lea.hbm %s2653_s0, %s1588_s5  ;;  %s177_s25 = scalar_lea.vmem [#allocation2], %s1470_s6 }
  0x30   : > { %s184_s28 = sshll.u32 %s177_s25, 4  ;;  %p2341_p10 = pnand %p2002_p6, %p37_p8  ;;  %s2345_s28 = int_to_ptr.vmem [resolvable:$true] %s184_s28 }
  0x31   : > { %s2347_s10 = scalar_lea.sflag [#allocation3], %s173_s26  ;;  %s2110_s11 = scalar_lea.hbm %s2339_s9, 4096 }
  0x32   : > { %p2111_p13 = scmp.ne.s32.totalorder %s2339_s9, %s2110_s11  ;;  %p2112_p0 = pneg %p2341_p10 }
  0x33   : > { %s2115_s5 = scalar_lea.hbm %s2653_s0, 28672  ;;  %p2116_p7 = scmp.lt.u32.totalorder %s2339_s9, %s2653_s0 }
  0x34   : > { %p2113_p3 = pnand %p2112_p0, %p2111_p13  ;;  %p2117_p9 = scmp.lt.u32.totalorder %s2115_s5, %s2110_s11 }
  0x35   : > { %p2119_p2 = scmp.lt.u32.totalorder %s2110_s11, %s2339_s9 }
  0x36   : > { %p2114_p5 = pneg %p2113_p3  ;;  %p2118_p1 = por %p2117_p9, %p2116_p7 }
  0x38   : > { %p2120_p4 = por %p2119_p2, %p2118_p1 }
  0x3a   : > { %p2121_p6 = pnand %p2120_p4, %p2114_p5 }
  0x3c   : > { %2124 = shalt.err (!%p2121_p6)
}
  0x3d   : > { %s2125_s26 = scalar_lea.vmem %s2345_s28, 4096  ;;  %s2215_s8 = smov [#allocation2]  }
  0x3e   : > { %p2126_p8 = scmp.ne.s32.totalorder %s2345_s28, %s2125_s26  ;;  %s2130_s25 = sshll.u32 %s2215_s8, 4  ;;  %s2131_s25 = int_to_ptr.vmem [resolvable:$false] %s2130_s25 }
  0x3f   : > { %s2132_s14 = scalar_lea.vmem %s2131_s25, 8192  ;;  %p2133_p3 = scmp.lt.s32.totalorder %s2345_s28, %s2131_s25 }
  0x40   : > { %p2128_p11 = pnand %p2126_p8, %p2112_p0  ;;  %p2134_p7 = scmp.lt.s32.totalorder %s2132_s14, %s2125_s26 }
  0x42   : > { %p2129_p13 = pneg %p2128_p11  ;;  %p2135_p9 = por %p2134_p7, %p2133_p3 }
  0x44   : > { %p2136_p1 = pnand %p2135_p9, %p2129_p13 }
  0x46   : > { %2139 = shalt.err (!%p2136_p1)
}
  0x47   : > { %1996 = dma.hbm_to_vmem [thread:$0]  (!%p2341_p10), %s2339_s9, 4096, %s2345_s28, %s2347_s10, %s2213_s12, %s2213_s12, %s2214_s13  }
  0x48   : > { %p2668_p0 = scmp.ne.s32.totalorder %s2663_s23, 0 }
  0x49   : > { %s2381_s11 = sand.u32 (!%p2668_p0), 1, %s2202_s16   ;;  %p2669_p5 = scmp.ne.s32.totalorder (!%p2668_p0), %s2661_s21, 0 }
  0x4a   : > { %196 = sbr.rel (%p2668_p0) target bundleno = 412 (0x19c), region = 36  ;;  %s1474_s20 = sshll.u32 (!%p2668_p0), %s2381_s11, 8 }
  0x4b   : > { %s199_s5 = scalar_lea.sflag (!%p2668_p0), [#allocation3], %s2381_s11  ;;  %s2387_s29 = scalar_lea.vmem (!%p2668_p0), [#allocation2], %s1474_s20 }
  0x51   : > { %2185 = dma.done.wait (%p2669_p5), %s199_s5, 4096  }
  0x52   : > { %2187 = vsyncadd (%p2669_p5), %s199_s5, 4294963200  ;;  %p2670_p10 = scmp.eq.s32.totalorder %s2265_s19, 0 }
  0x54   : > { %2189 = dma.done.wait (%p2670_p10), [#allocation6], 1024   ;;  %p2671_p2 = pmov %p2670_p10 }
  0x55   : > { %v2042_v0 = vld [vmem:[#allocation5] sm:$0xff]   ;;  %v2043_v1 = vld [vmem:[#allocation5 + $0x8] sm:$0xff]   ;;  %v2044_v2 = vld [vmem:[#allocation5 + $0x10] sm:$0xff]   ;;  %s2457_s9 = scalar_lea.vmem [#allocation7], %s1474_s20  ;;  %s1653_s28 = sshll.u32 %s2265_s19, 12 }
  0x56   : > { %2191 = vsyncadd (%p2671_p2), [#allocation6], 4294966272  ;;  %1885 = vmatprep.subr.bf16.mxu0 %v2042_v0  ;;  %1965 = vmatprep.subr.bf16.mxu1 %v2042_v0  ;;  %v2045_v3 = vld [vmem:[#allocation5 + $0x18] sm:$0xff]   ;;  %v2050_v4 = vld [vmem:[%s2387_s29] sm:$0xff]   ;;  %s1383_s10 = sshll.u32 %s2457_s9, 4  ;;  %s2604_s7 = scalar_lea.hbm %s2657_s4, %s1653_s28  ;;  %s2606_s10 = int_to_ptr.vmem [resolvable:$true] %s1383_s10 }
  0x57   : > { %1886 = vmatpush3.bf16.msra.mxu0 %v2042_v0  ;;  %1973 = vmatpush3.bf16.msra.mxu1 %v2042_v0  ;;  %v2051_v5 = vld [vmem:[%s2387_s29 + $0x80] sm:$0xff]   ;;  %v2047_v7 = vld [vmem:[#allocation5 + $0x28] sm:$0xff]   ;;  %v2048_v8 = vld [vmem:[#allocation5 + $0x30] sm:$0xff]   ;;  %s1370_s26 = scalar_lea.sflag [#allocation4], %s2381_s11  ;;  %s2140_s8 = scalar_lea.vmem %s2606_s10, 4096 }
  0x58   : > { %1887 = vmatprep.subr.bf16.mxu0 %v2043_v1  ;;  %1966 = vmatprep.subr.bf16.mxu1 %v2043_v1  ;;  %v2046_v6 = vld [vmem:[#allocation5 + $0x20] sm:$0xff]   ;;  %v2049_v9 = vld [vmem:[#allocation5 + $0x38] sm:$0xff]   ;;  %v2052_v10 = vld [vmem:[%s2387_s29 + $0x8] sm:$0xff]   ;;  %p2141_p4 = scmp.ne.s32.totalorder %s2606_s10, %s2140_s8  ;;  %s2216_s25 = smov [#allocation7]  }
  0x59   : > { %1901 = vmatprep.mubr.bf16.mxu0 %v2050_v4  ;;  %1933 = vmatprep.mubr.bf16.mxu1 %v2051_v5  ;;  %v2053_v11 = vld [vmem:[%s2387_s29 + $0x88] sm:$0xff]   ;;  %v2054_v12 = vld [vmem:[%s2387_s29 + $0x10] sm:$0xff]   ;;  %v2056_v14 = vld [vmem:[%s2387_s29 + $0x18] sm:$0xff]   ;;  %s2144_s14 = sshll.u32 %s2216_s25, 4  ;;  %s2145_s14 = int_to_ptr.vmem [resolvable:$false] %s2144_s14 }
  0x5a   : > { %v2055_v13 = vld [vmem:[%s2387_s29 + $0x90] sm:$0xff]   ;;  %v2057_v15 = vld [vmem:[%s2387_s29 + $0x98] sm:$0xff]   ;;  %v2058_v16 = vld [vmem:[%s2387_s29 + $0x20] sm:$0xff]   ;;  %p2142_p6 = pnand %p2141_p4, %p2330_p12  ;;  %s2146_s20 = scalar_lea.vmem %s2145_s14, 8192 }
  0x5b   : > { %1888 = vmatpush3.bf16.msra.mxu0 %v2043_v1  ;;  %1974 = vmatpush3.bf16.msra.mxu1 %v2043_v1  ;;  %v2059_v17 = vld [vmem:[%s2387_s29 + $0xa0] sm:$0xff]   ;;  %v2060_v18 = vld [vmem:[%s2387_s29 + $0x28] sm:$0xff]   ;;  %v2062_v20 = vld [vmem:[%s2387_s29 + $0x30] sm:$0xff]   ;;  %p2147_p11 = scmp.lt.s32.totalorder %s2606_s10, %s2145_s14  ;;  %p2148_p13 = scmp.lt.s32.totalorder %s2146_s20, %s2140_s8 }
  0x5c   : > { %1889 = vmatprep.subr.bf16.mxu0 %v2044_v2  ;;  %1967 = vmatprep.subr.bf16.mxu1 %v2044_v2  ;;  %v2061_v19 = vld [vmem:[%s2387_s29 + $0xa8] sm:$0xff]   ;;  %v2063_v21 = vld [vmem:[%s2387_s29 + $0xb0] sm:$0xff]   ;;  %v2064_v22 = vld [vmem:[%s2387_s29 + $0x38] sm:$0xff]   ;;  %p2143_p8 = pneg %p2142_p6 }
  0x5d   : > { %v2065_v23 = vld [vmem:[%s2387_s29 + $0xb8] sm:$0xff]   ;;  %v2066_v24 = vld [vmem:[%s2387_s29 + $0x40] sm:$0xff]   ;;  %v2068_v26 = vld [vmem:[%s2387_s29 + $0x48] sm:$0xff]   ;;  %p2149_p3 = por %p2148_p13, %p2147_p11 }
  0x5e   : > { %v2067_v25 = vld [vmem:[%s2387_s29 + $0xc0] sm:$0xff]   ;;  %v2069_v27 = vld [vmem:[%s2387_s29 + $0xc8] sm:$0xff]   ;;  %v2070_v28 = vld [vmem:[%s2387_s29 + $0x50] sm:$0xff]  }
  0x5f   : > { %1890 = vmatpush3.bf16.msra.mxu0 %v2044_v2  ;;  %1975 = vmatpush3.bf16.msra.mxu1 %v2044_v2  ;;  %v2071_v29 = vld [vmem:[%s2387_s29 + $0xd0] sm:$0xff]   ;;  %v2072_v30 = vld [vmem:[%s2387_s29 + $0x58] sm:$0xff]   ;;  %v2074_v32 = vld [vmem:[%s2387_s29 + $0x60] sm:$0xff]   ;;  %p2150_p7 = pnand %p2149_p3, %p2143_p8 }
  0x60   : > { %1891 = vmatprep.subr.bf16.mxu0 %v2045_v3  ;;  %1968 = vmatprep.subr.bf16.mxu1 %v2045_v3  ;;  %v2073_v31 = vld [vmem:[%s2387_s29 + $0xd8] sm:$0xff]   ;;  %v2075_v33 = vld [vmem:[%s2387_s29 + $0xe0] sm:$0xff]   ;;  %v2076_v34 = vld [vmem:[%s2387_s29 + $0x68] sm:$0xff]  }
  0x61   : > { %v2077_v35 = vld [vmem:[%s2387_s29 + $0xe8] sm:$0xff]   ;;  %v2078_v36 = vld [vmem:[%s2387_s29 + $0x70] sm:$0xff]   ;;  %v2080_v38 = vld [vmem:[%s2387_s29 + $0x78] sm:$0xff]  }
  0x62   : > { %v2079_v37 = vld [vmem:[%s2387_s29 + $0xf0] sm:$0xff]   ;;  %v2081_v39 = vld [vmem:[%s2387_s29 + $0xf8] sm:$0xff]   ;;  %v2432_v41 = vld [vmem:[%s2655_s2] ss:$0 sm:$0xff] }
  0x63   : > { %1892 = vmatpush3.bf16.msra.mxu0 %v2045_v3  ;;  %1976 = vmatpush3.bf16.msra.mxu1 %v2045_v3  ;;  %v2439_v57 = vld [vmem:[%s2656_s3] ss:$0 sm:$0xff] }
  0x64   : > { %1893 = vmatprep.subr.bf16.mxu0 %v2046_v6  ;;  %1969 = vmatprep.subr.bf16.mxu1 %v2046_v6 }
  0x67   : > { %1894 = vmatpush3.bf16.msra.mxu0 %v2046_v6  ;;  %1977 = vmatpush3.bf16.msra.mxu1 %v2046_v6 }
  0x68   : > { %1895 = vmatprep.subr.bf16.mxu0 %v2047_v7  ;;  %1970 = vmatprep.subr.bf16.mxu1 %v2047_v7 }
  0x6b   : > { %1896 = vmatpush3.bf16.msra.mxu0 %v2047_v7  ;;  %1978 = vmatpush3.bf16.msra.mxu1 %v2047_v7 }
  0x6c   : > { %1897 = vmatprep.subr.bf16.mxu0 %v2048_v8  ;;  %1971 = vmatprep.subr.bf16.mxu1 %v2048_v8 }
  0x6f   : > { %1898 = vmatpush3.bf16.msra.mxu0 %v2048_v8  ;;  %1979 = vmatpush3.bf16.msra.mxu1 %v2048_v8 }
  0x70   : > { %1899 = vmatprep.subr.bf16.mxu0 %v2049_v9  ;;  %1972 = vmatprep.subr.bf16.mxu1 %v2049_v9 }
  0x73   : > { %1900 = vmatpush3.bf16.msra.mxu0 %v2049_v9  ;;  %1980 = vmatpush3.bf16.msra.mxu1 %v2049_v9 }
  0x76   : > { %1902 = vmatmul.mubr.bf16.vlgmr.msra.gmra.mrb[0].mxu0 %v2052_v10  ;;  %1934 = vmatmul.mubr.bf16.vlgmr.msra.gmra.mrb[0].mxu1 %v2053_v11 }
  0x77   : > { %1905 = vmatprep.mubr.bf16.mxu0 %v2054_v12  ;;  %1937 = vmatprep.mubr.bf16.mxu1 %v2055_v13 }
  0x7e   : > { %1906 = vmatmul.mubr.bf16.gmra.mrb[4].mxu0 %v2056_v14  ;;  %1938 = vmatmul.mubr.bf16.gmra.mrb[4].mxu1 %v2057_v15 }
  0x7f   : > { %1909 = vmatprep.mubr.bf16.mxu0 %v2058_v16  ;;  %1941 = vmatprep.mubr.bf16.mxu1 %v2059_v17 }
  0x86   : > { %1910 = vmatmul.mubr.bf16.gmra.mrb[8].mxu0 %v2060_v18  ;;  %1942 = vmatmul.mubr.bf16.gmra.mrb[8].mxu1 %v2061_v19 }
  0x87   : > { %1913 = vmatprep.mubr.bf16.mxu0 %v2062_v20  ;;  %1945 = vmatprep.mubr.bf16.mxu1 %v2063_v21 }
  0x8e   : > { %1914 = vmatmul.mubr.bf16.gmra.mrb[12].mxu0 %v2064_v22  ;;  %1946 = vmatmul.mubr.bf16.gmra.mrb[12].mxu1 %v2065_v23 }
  0x8f   : > { %1917 = vmatprep.mubr.bf16.mxu0 %v2066_v24  ;;  %1949 = vmatprep.mubr.bf16.mxu1 %v2067_v25 }
  0x96   : > { %1918 = vmatmul.mubr.bf16.gmra.mrb[16].mxu0 %v2068_v26  ;;  %1950 = vmatmul.mubr.bf16.gmra.mrb[16].mxu1 %v2069_v27 }
  0x97   : > { %1921 = vmatprep.mubr.bf16.mxu0 %v2070_v28  ;;  %1953 = vmatprep.mubr.bf16.mxu1 %v2071_v29 }
  0x9e   : > { %1922 = vmatmul.mubr.bf16.gmra.mrb[20].mxu0 %v2072_v30  ;;  %1954 = vmatmul.mubr.bf16.gmra.mrb[20].mxu1 %v2073_v31 }
  0x9f   : > { %1925 = vmatprep.mubr.bf16.mxu0 %v2074_v32  ;;  %1957 = vmatprep.mubr.bf16.mxu1 %v2075_v33 }
  0xa6   : > { %1926 = vmatmul.mubr.bf16.gmra.mrb[24].mxu0 %v2076_v34  ;;  %1958 = vmatmul.mubr.bf16.gmra.mrb[24].mxu1 %v2077_v35 }
  0xa7   : > { %1929 = vmatprep.mubr.bf16.mxu0 %v2078_v36  ;;  %1961 = vmatprep.mubr.bf16.mxu1 %v2079_v37 }
  0xae   : > { %1930 = vmatmul.mubr.bf16.gmra.mrb[28].mxu0 %v2080_v38  ;;  %1962 = vmatmul.mubr.bf16.gmra.mrb[28].mxu1 %v2081_v39 }
 0x149   : > { %v1903_v40 = vpop.f32.mrb[0].mxu0  ;;  %v1935_v42 = vpop.f32.mrb[0].mxu1 }
 0x14a   : > { %v845_v43 = vmax.f32 %v1903_v40, 0.0  ;;  %v877_v44 = vmax.f32 %v1935_v42, 0.0  ;;  %v588_v45 = vpop.f32.mrb[1].mxu0  ;;  %v716_v46 = vpop.f32.mrb[1].mxu1 }
 0x14b   : > { %v843_v47 = vmax.f32 %v588_v45, 0.0  ;;  %v875_v48 = vmax.f32 %v716_v46, 0.0  ;;  %v1904_v49 = vpop.f32.mrb[2].mxu0  ;;  %v1936_v50 = vpop.f32.mrb[2].mxu1 }
 0x14c   : > { %v916_v51 = vmul.f32 %v2432_v41, %v845_v43  ;;  %v948_v52 = vmul.f32 %v2432_v41, %v877_v44  ;;  %v846_v53 = vmax.f32 %v1904_v49, 0.0  ;;  %v878_v54 = vmax.f32 %v1936_v50, 0.0  ;;  %v591_v55 = vpop.f32.mrb[3].mxu0  ;;  %v719_v56 = vpop.f32.mrb[3].mxu1 }
 0x14d   : > { %v914_v58 = vmul.f32 %v2432_v41, %v843_v47  ;;  %v946_v59 = vmul.f32 %v2432_v41, %v875_v48  ;;  %v844_v60 = vmax.f32 %v591_v55, 0.0  ;;  %v876_v61 = vmax.f32 %v719_v56, 0.0 }
 0x14e   : > { %v917_v62 = vmul.f32 %v2432_v41, %v846_v53  ;;  %v949_v63 = vmul.f32 %v2432_v41, %v878_v54  ;;  %v987_v2 = vadd.f32 %v2439_v57, %v916_v51  ;;  %v1019_v3 = vadd.f32 %v2439_v57, %v948_v52 }
 0x14f   : > { %v915_v0 = vmul.f32 %v2432_v41, %v844_v60  ;;  %v947_v1 = vmul.f32 %v2432_v41, %v876_v61  ;;  %v985_v6 = vadd.f32 %v2439_v57, %v914_v58  ;;  %v1017_v7 = vadd.f32 %v2439_v57, %v946_v59 }
 0x150   : > { %v988_v4 = vadd.f32 %v2439_v57, %v917_v62  ;;  %v1020_v5 = vadd.f32 %v2439_v57, %v949_v63 }
 0x151   : > { %v986_v8 = vadd.f32 %v2439_v57, %v915_v0  ;;  %v1018_v9 = vadd.f32 %v2439_v57, %v947_v1  ;;  %v1907_v10 = vpop.f32.mrb[4].mxu0  ;;  %v1939_v11 = vpop.f32.mrb[4].mxu1 }
 0x152   : > { %v1662_v12 = vpack.c.bf16 %v988_v4, %v987_v2  ;;  %v1742_v13 = vpack.c.bf16 %v1020_v5, %v1019_v3  ;;  %v849_v14 = vmax.f32 %v1907_v10, 0.0  ;;  %v881_v15 = vmax.f32 %v1939_v11, 0.0  ;;  %v604_v16 = vpop.f32.mrb[5].mxu0  ;;  %v732_v17 = vpop.f32.mrb[5].mxu1 }
 0x153   : > { %v1657_v18 = vpack.c.bf16 %v986_v8, %v985_v6  ;;  %v1737_v19 = vpack.c.bf16 %v1018_v9, %v1017_v7  ;;  %v847_v20 = vmax.f32 %v604_v16, 0.0  ;;  %v879_v21 = vmax.f32 %v732_v17, 0.0  ;;  %v1908_v22 = vpop.f32.mrb[6].mxu0  ;;  %v1940_v23 = vpop.f32.mrb[6].mxu1 }
 0x154   : > { %1814 = vst [vmem:[%s2457_s9 + $0x8] sm:$0xff] %v1662_v12   ;;  %1830 = vst [vmem:[%s2457_s9 + $0x88] sm:$0xff] %v1742_v13   ;;  %v920_v24 = vmul.f32 %v2432_v41, %v849_v14  ;;  %v952_v25 = vmul.f32 %v2432_v41, %v881_v15  ;;  %v850_v26 = vmax.f32 %v1908_v22, 0.0  ;;  %v882_v27 = vmax.f32 %v1940_v23, 0.0  ;;  %v607_v28 = vpop.f32.mrb[7].mxu0  ;;  %v735_v29 = vpop.f32.mrb[7].mxu1 }
 0x155   : > { %1658 = vst [vmem:[%s2457_s9] sm:$0xff] %v1657_v18   ;;  %1829 = vst [vmem:[%s2457_s9 + $0x80] sm:$0xff] %v1737_v19   ;;  %v918_v30 = vmul.f32 %v2432_v41, %v847_v20  ;;  %v950_v31 = vmul.f32 %v2432_v41, %v879_v21  ;;  %v848_v32 = vmax.f32 %v607_v28, 0.0  ;;  %v880_v33 = vmax.f32 %v735_v29, 0.0 }
 0x156   : > { %v921_v34 = vmul.f32 %v2432_v41, %v850_v26  ;;  %v953_v35 = vmul.f32 %v2432_v41, %v882_v27  ;;  %v991_v38 = vadd.f32 %v2439_v57, %v920_v24  ;;  %v1023_v39 = vadd.f32 %v2439_v57, %v952_v25 }
 0x157   : > { %v919_v36 = vmul.f32 %v2432_v41, %v848_v32  ;;  %v951_v37 = vmul.f32 %v2432_v41, %v880_v33  ;;  %v989_v43 = vadd.f32 %v2439_v57, %v918_v30  ;;  %v1021_v44 = vadd.f32 %v2439_v57, %v950_v31 }
 0x158   : > { %v992_v40 = vadd.f32 %v2439_v57, %v921_v34  ;;  %v1024_v42 = vadd.f32 %v2439_v57, %v953_v35 }
 0x159   : > { %v990_v45 = vadd.f32 %v2439_v57, %v919_v36  ;;  %v1022_v46 = vadd.f32 %v2439_v57, %v951_v37  ;;  %v1911_v47 = vpop.f32.mrb[8].mxu0  ;;  %v1943_v48 = vpop.f32.mrb[8].mxu1 }
 0x15a   : > { %v1672_v49 = vpack.c.bf16 %v992_v40, %v991_v38  ;;  %v1752_v50 = vpack.c.bf16 %v1024_v42, %v1023_v39  ;;  %v853_v51 = vmax.f32 %v1911_v47, 0.0  ;;  %v885_v52 = vmax.f32 %v1943_v48, 0.0  ;;  %v620_v53 = vpop.f32.mrb[9].mxu0  ;;  %v748_v54 = vpop.f32.mrb[9].mxu1 }
 0x15b   : > { %v1667_v55 = vpack.c.bf16 %v990_v45, %v989_v43  ;;  %v1747_v56 = vpack.c.bf16 %v1022_v46, %v1021_v44  ;;  %v851_v58 = vmax.f32 %v620_v53, 0.0  ;;  %v883_v59 = vmax.f32 %v748_v54, 0.0  ;;  %v1912_v60 = vpop.f32.mrb[10].mxu0  ;;  %v1944_v61 = vpop.f32.mrb[10].mxu1 }
 0x15c   : > { %1816 = vst [vmem:[%s2457_s9 + $0x18] sm:$0xff] %v1672_v49   ;;  %1832 = vst [vmem:[%s2457_s9 + $0x98] sm:$0xff] %v1752_v50   ;;  %v924_v62 = vmul.f32 %v2432_v41, %v853_v51  ;;  %v956_v63 = vmul.f32 %v2432_v41, %v885_v52  ;;  %v854_v0 = vmax.f32 %v1912_v60, 0.0  ;;  %v886_v1 = vmax.f32 %v1944_v61, 0.0  ;;  %v623_v2 = vpop.f32.mrb[11].mxu0  ;;  %v751_v3 = vpop.f32.mrb[11].mxu1 }
 0x15d   : > { %1815 = vst [vmem:[%s2457_s9 + $0x10] sm:$0xff] %v1667_v55   ;;  %1831 = vst [vmem:[%s2457_s9 + $0x90] sm:$0xff] %v1747_v56   ;;  %v922_v4 = vmul.f32 %v2432_v41, %v851_v58  ;;  %v954_v5 = vmul.f32 %v2432_v41, %v883_v59  ;;  %v852_v6 = vmax.f32 %v623_v2, 0.0  ;;  %v884_v7 = vmax.f32 %v751_v3, 0.0 }
 0x15e   : > { %v925_v8 = vmul.f32 %v2432_v41, %v854_v0  ;;  %v957_v9 = vmul.f32 %v2432_v41, %v886_v1  ;;  %v995_v12 = vadd.f32 %v2439_v57, %v924_v62  ;;  %v1027_v13 = vadd.f32 %v2439_v57, %v956_v63 }
 0x15f   : > { %v923_v10 = vmul.f32 %v2432_v41, %v852_v6  ;;  %v955_v11 = vmul.f32 %v2432_v41, %v884_v7  ;;  %v993_v16 = vadd.f32 %v2439_v57, %v922_v4  ;;  %v1025_v17 = vadd.f32 %v2439_v57, %v954_v5 }
 0x160   : > { %v996_v14 = vadd.f32 %v2439_v57, %v925_v8  ;;  %v1028_v15 = vadd.f32 %v2439_v57, %v957_v9 }
 0x161   : > { %v994_v18 = vadd.f32 %v2439_v57, %v923_v10  ;;  %v1026_v19 = vadd.f32 %v2439_v57, %v955_v11  ;;  %v1915_v20 = vpop.f32.mrb[12].mxu0  ;;  %v1947_v21 = vpop.f32.mrb[12].mxu1 }
 0x162   : > { %v1682_v22 = vpack.c.bf16 %v996_v14, %v995_v12  ;;  %v1762_v23 = vpack.c.bf16 %v1028_v15, %v1027_v13  ;;  %v857_v24 = vmax.f32 %v1915_v20, 0.0  ;;  %v889_v25 = vmax.f32 %v1947_v21, 0.0  ;;  %v636_v26 = vpop.f32.mrb[13].mxu0  ;;  %v764_v27 = vpop.f32.mrb[13].mxu1 }
 0x163   : > { %v1677_v28 = vpack.c.bf16 %v994_v18, %v993_v16  ;;  %v1757_v29 = vpack.c.bf16 %v1026_v19, %v1025_v17  ;;  %v855_v30 = vmax.f32 %v636_v26, 0.0  ;;  %v887_v31 = vmax.f32 %v764_v27, 0.0  ;;  %v1916_v32 = vpop.f32.mrb[14].mxu0  ;;  %v1948_v33 = vpop.f32.mrb[14].mxu1 }
 0x164   : > { %1818 = vst [vmem:[%s2457_s9 + $0x28] sm:$0xff] %v1682_v22   ;;  %1834 = vst [vmem:[%s2457_s9 + $0xa8] sm:$0xff] %v1762_v23   ;;  %v928_v34 = vmul.f32 %v2432_v41, %v857_v24  ;;  %v960_v35 = vmul.f32 %v2432_v41, %v889_v25  ;;  %v858_v36 = vmax.f32 %v1916_v32, 0.0  ;;  %v890_v37 = vmax.f32 %v1948_v33, 0.0  ;;  %v639_v38 = vpop.f32.mrb[15].mxu0  ;;  %v767_v39 = vpop.f32.mrb[15].mxu1 }
 0x165   : > { %1817 = vst [vmem:[%s2457_s9 + $0x20] sm:$0xff] %v1677_v28   ;;  %1833 = vst [vmem:[%s2457_s9 + $0xa0] sm:$0xff] %v1757_v29   ;;  %v926_v40 = vmul.f32 %v2432_v41, %v855_v30  ;;  %v958_v42 = vmul.f32 %v2432_v41, %v887_v31  ;;  %v856_v43 = vmax.f32 %v639_v38, 0.0  ;;  %v888_v44 = vmax.f32 %v767_v39, 0.0 }
 0x166   : > { %v929_v45 = vmul.f32 %v2432_v41, %v858_v36  ;;  %v961_v46 = vmul.f32 %v2432_v41, %v890_v37  ;;  %v999_v49 = vadd.f32 %v2439_v57, %v928_v34  ;;  %v1031_v50 = vadd.f32 %v2439_v57, %v960_v35 }
 0x167   : > { %v927_v47 = vmul.f32 %v2432_v41, %v856_v43  ;;  %v959_v48 = vmul.f32 %v2432_v41, %v888_v44  ;;  %v997_v53 = vadd.f32 %v2439_v57, %v926_v40  ;;  %v1029_v54 = vadd.f32 %v2439_v57, %v958_v42 }
 0x168   : > { %v1000_v51 = vadd.f32 %v2439_v57, %v929_v45  ;;  %v1032_v52 = vadd.f32 %v2439_v57, %v961_v46 }
 0x169   : > { %v998_v55 = vadd.f32 %v2439_v57, %v927_v47  ;;  %v1030_v56 = vadd.f32 %v2439_v57, %v959_v48  ;;  %v1919_v58 = vpop.f32.mrb[16].mxu0  ;;  %v1951_v59 = vpop.f32.mrb[16].mxu1 }
 0x16a   : > { %v1692_v60 = vpack.c.bf16 %v1000_v51, %v999_v49  ;;  %v1772_v61 = vpack.c.bf16 %v1032_v52, %v1031_v50  ;;  %v861_v62 = vmax.f32 %v1919_v58, 0.0  ;;  %v893_v63 = vmax.f32 %v1951_v59, 0.0  ;;  %v652_v0 = vpop.f32.mrb[17].mxu0  ;;  %v780_v1 = vpop.f32.mrb[17].mxu1 }
 0x16b   : > { %v1687_v2 = vpack.c.bf16 %v998_v55, %v997_v53  ;;  %v1767_v3 = vpack.c.bf16 %v1030_v56, %v1029_v54  ;;  %v859_v4 = vmax.f32 %v652_v0, 0.0  ;;  %v891_v5 = vmax.f32 %v780_v1, 0.0  ;;  %v1920_v6 = vpop.f32.mrb[18].mxu0  ;;  %v1952_v7 = vpop.f32.mrb[18].mxu1 }
 0x16c   : > { %1820 = vst [vmem:[%s2457_s9 + $0x38] sm:$0xff] %v1692_v60   ;;  %1836 = vst [vmem:[%s2457_s9 + $0xb8] sm:$0xff] %v1772_v61   ;;  %v932_v8 = vmul.f32 %v2432_v41, %v861_v62  ;;  %v964_v9 = vmul.f32 %v2432_v41, %v893_v63  ;;  %v862_v10 = vmax.f32 %v1920_v6, 0.0  ;;  %v894_v11 = vmax.f32 %v1952_v7, 0.0  ;;  %v655_v12 = vpop.f32.mrb[19].mxu0  ;;  %v783_v13 = vpop.f32.mrb[19].mxu1 }
 0x16d   : > { %1819 = vst [vmem:[%s2457_s9 + $0x30] sm:$0xff] %v1687_v2   ;;  %1835 = vst [vmem:[%s2457_s9 + $0xb0] sm:$0xff] %v1767_v3   ;;  %v930_v14 = vmul.f32 %v2432_v41, %v859_v4  ;;  %v962_v15 = vmul.f32 %v2432_v41, %v891_v5  ;;  %v860_v16 = vmax.f32 %v655_v12, 0.0  ;;  %v892_v17 = vmax.f32 %v783_v13, 0.0 }
 0x16e   : > { %v933_v18 = vmul.f32 %v2432_v41, %v862_v10  ;;  %v965_v19 = vmul.f32 %v2432_v41, %v894_v11  ;;  %v1003_v22 = vadd.f32 %v2439_v57, %v932_v8  ;;  %v1035_v23 = vadd.f32 %v2439_v57, %v964_v9 }
 0x16f   : > { %v931_v20 = vmul.f32 %v2432_v41, %v860_v16  ;;  %v963_v21 = vmul.f32 %v2432_v41, %v892_v17  ;;  %v1001_v26 = vadd.f32 %v2439_v57, %v930_v14  ;;  %v1033_v27 = vadd.f32 %v2439_v57, %v962_v15 }
 0x170   : > { %v1004_v24 = vadd.f32 %v2439_v57, %v933_v18  ;;  %v1036_v25 = vadd.f32 %v2439_v57, %v965_v19 }
 0x171   : > { %v1002_v28 = vadd.f32 %v2439_v57, %v931_v20  ;;  %v1034_v29 = vadd.f32 %v2439_v57, %v963_v21  ;;  %v1923_v30 = vpop.f32.mrb[20].mxu0  ;;  %v1955_v31 = vpop.f32.mrb[20].mxu1 }
 0x172   : > { %v1702_v32 = vpack.c.bf16 %v1004_v24, %v1003_v22  ;;  %v1782_v33 = vpack.c.bf16 %v1036_v25, %v1035_v23  ;;  %v865_v34 = vmax.f32 %v1923_v30, 0.0  ;;  %v897_v35 = vmax.f32 %v1955_v31, 0.0  ;;  %v668_v36 = vpop.f32.mrb[21].mxu0  ;;  %v796_v37 = vpop.f32.mrb[21].mxu1 }
 0x173   : > { %v1697_v38 = vpack.c.bf16 %v1002_v28, %v1001_v26  ;;  %v1777_v39 = vpack.c.bf16 %v1034_v29, %v1033_v27  ;;  %v863_v40 = vmax.f32 %v668_v36, 0.0  ;;  %v895_v42 = vmax.f32 %v796_v37, 0.0  ;;  %v1924_v43 = vpop.f32.mrb[22].mxu0  ;;  %v1956_v44 = vpop.f32.mrb[22].mxu1 }
 0x174   : > { %1822 = vst [vmem:[%s2457_s9 + $0x48] sm:$0xff] %v1702_v32   ;;  %1838 = vst [vmem:[%s2457_s9 + $0xc8] sm:$0xff] %v1782_v33   ;;  %v936_v45 = vmul.f32 %v2432_v41, %v865_v34  ;;  %v968_v46 = vmul.f32 %v2432_v41, %v897_v35  ;;  %v866_v47 = vmax.f32 %v1924_v43, 0.0  ;;  %v898_v48 = vmax.f32 %v1956_v44, 0.0  ;;  %v671_v49 = vpop.f32.mrb[23].mxu0  ;;  %v799_v50 = vpop.f32.mrb[23].mxu1 }
 0x175   : > { %1821 = vst [vmem:[%s2457_s9 + $0x40] sm:$0xff] %v1697_v38   ;;  %1837 = vst [vmem:[%s2457_s9 + $0xc0] sm:$0xff] %v1777_v39   ;;  %v934_v51 = vmul.f32 %v2432_v41, %v863_v40  ;;  %v966_v52 = vmul.f32 %v2432_v41, %v895_v42  ;;  %v864_v53 = vmax.f32 %v671_v49, 0.0  ;;  %v896_v54 = vmax.f32 %v799_v50, 0.0 }
 0x176   : > { %v937_v55 = vmul.f32 %v2432_v41, %v866_v47  ;;  %v969_v56 = vmul.f32 %v2432_v41, %v898_v48  ;;  %v1007_v60 = vadd.f32 %v2439_v57, %v936_v45  ;;  %v1039_v61 = vadd.f32 %v2439_v57, %v968_v46 }
 0x177   : > { %v935_v58 = vmul.f32 %v2432_v41, %v864_v53  ;;  %v967_v59 = vmul.f32 %v2432_v41, %v896_v54  ;;  %v1005_v0 = vadd.f32 %v2439_v57, %v934_v51  ;;  %v1037_v1 = vadd.f32 %v2439_v57, %v966_v52 }
 0x178   : > { %v1008_v62 = vadd.f32 %v2439_v57, %v937_v55  ;;  %v1040_v63 = vadd.f32 %v2439_v57, %v969_v56 }
 0x179   : > { %v1006_v2 = vadd.f32 %v2439_v57, %v935_v58  ;;  %v1038_v3 = vadd.f32 %v2439_v57, %v967_v59  ;;  %v1927_v4 = vpop.f32.mrb[24].mxu0  ;;  %v1959_v5 = vpop.f32.mrb[24].mxu1 }
 0x17a   : > { %v1712_v6 = vpack.c.bf16 %v1008_v62, %v1007_v60  ;;  %v1792_v7 = vpack.c.bf16 %v1040_v63, %v1039_v61  ;;  %v869_v8 = vmax.f32 %v1927_v4, 0.0  ;;  %v901_v9 = vmax.f32 %v1959_v5, 0.0  ;;  %v684_v10 = vpop.f32.mrb[25].mxu0  ;;  %v812_v11 = vpop.f32.mrb[25].mxu1 }
 0x17b   : > { %v1707_v12 = vpack.c.bf16 %v1006_v2, %v1005_v0  ;;  %v1787_v13 = vpack.c.bf16 %v1038_v3, %v1037_v1  ;;  %v867_v14 = vmax.f32 %v684_v10, 0.0  ;;  %v899_v15 = vmax.f32 %v812_v11, 0.0  ;;  %v1928_v16 = vpop.f32.mrb[26].mxu0  ;;  %v1960_v17 = vpop.f32.mrb[26].mxu1 }
 0x17c   : > { %1824 = vst [vmem:[%s2457_s9 + $0x58] sm:$0xff] %v1712_v6   ;;  %1840 = vst [vmem:[%s2457_s9 + $0xd8] sm:$0xff] %v1792_v7   ;;  %v940_v18 = vmul.f32 %v2432_v41, %v869_v8  ;;  %v972_v19 = vmul.f32 %v2432_v41, %v901_v9  ;;  %v870_v20 = vmax.f32 %v1928_v16, 0.0  ;;  %v902_v21 = vmax.f32 %v1960_v17, 0.0  ;;  %v687_v22 = vpop.f32.mrb[27].mxu0  ;;  %v815_v23 = vpop.f32.mrb[27].mxu1 }
 0x17d   : > { %1823 = vst [vmem:[%s2457_s9 + $0x50] sm:$0xff] %v1707_v12   ;;  %1839 = vst [vmem:[%s2457_s9 + $0xd0] sm:$0xff] %v1787_v13   ;;  %v938_v24 = vmul.f32 %v2432_v41, %v867_v14  ;;  %v970_v25 = vmul.f32 %v2432_v41, %v899_v15  ;;  %v868_v26 = vmax.f32 %v687_v22, 0.0  ;;  %v900_v27 = vmax.f32 %v815_v23, 0.0 }
 0x17e   : > { %v941_v28 = vmul.f32 %v2432_v41, %v870_v20  ;;  %v973_v29 = vmul.f32 %v2432_v41, %v902_v21  ;;  %v1011_v32 = vadd.f32 %v2439_v57, %v940_v18  ;;  %v1043_v33 = vadd.f32 %v2439_v57, %v972_v19 }
 0x17f   : > { %v939_v30 = vmul.f32 %v2432_v41, %v868_v26  ;;  %v971_v31 = vmul.f32 %v2432_v41, %v900_v27  ;;  %v1009_v36 = vadd.f32 %v2439_v57, %v938_v24  ;;  %v1041_v37 = vadd.f32 %v2439_v57, %v970_v25 }
 0x180   : > { %v1012_v34 = vadd.f32 %v2439_v57, %v941_v28  ;;  %v1044_v35 = vadd.f32 %v2439_v57, %v973_v29 }
 0x181   : > { %v1010_v38 = vadd.f32 %v2439_v57, %v939_v30  ;;  %v1042_v39 = vadd.f32 %v2439_v57, %v971_v31  ;;  %v1931_v40 = vpop.f32.mrb[28].mxu0  ;;  %v1963_v42 = vpop.f32.mrb[28].mxu1 }
 0x182   : > { %v1722_v43 = vpack.c.bf16 %v1012_v34, %v1011_v32  ;;  %v1802_v44 = vpack.c.bf16 %v1044_v35, %v1043_v33  ;;  %v873_v45 = vmax.f32 %v1931_v40, 0.0  ;;  %v905_v46 = vmax.f32 %v1963_v42, 0.0  ;;  %v700_v47 = vpop.f32.mrb[29].mxu0  ;;  %v828_v48 = vpop.f32.mrb[29].mxu1 }
 0x183   : > { %v1717_v49 = vpack.c.bf16 %v1010_v38, %v1009_v36  ;;  %v1797_v50 = vpack.c.bf16 %v1042_v39, %v1041_v37  ;;  %v871_v51 = vmax.f32 %v700_v47, 0.0  ;;  %v903_v52 = vmax.f32 %v828_v48, 0.0  ;;  %v1932_v53 = vpop.f32.mrb[30].mxu0  ;;  %v1964_v54 = vpop.f32.mrb[30].mxu1 }
 0x184   : > { %1826 = vst [vmem:[%s2457_s9 + $0x68] sm:$0xff] %v1722_v43   ;;  %1842 = vst [vmem:[%s2457_s9 + $0xe8] sm:$0xff] %v1802_v44   ;;  %v944_v55 = vmul.f32 %v2432_v41, %v873_v45  ;;  %v976_v56 = vmul.f32 %v2432_v41, %v905_v46  ;;  %v874_v58 = vmax.f32 %v1932_v53, 0.0  ;;  %v906_v59 = vmax.f32 %v1964_v54, 0.0  ;;  %v703_v60 = vpop.f32.mrb[31].mxu0  ;;  %v831_v61 = vpop.f32.mrb[31].mxu1 }
 0x185   : > { %1825 = vst [vmem:[%s2457_s9 + $0x60] sm:$0xff] %v1717_v49   ;;  %1841 = vst [vmem:[%s2457_s9 + $0xe0] sm:$0xff] %v1797_v50   ;;  %v942_v62 = vmul.f32 %v2432_v41, %v871_v51  ;;  %v974_v63 = vmul.f32 %v2432_v41, %v903_v52  ;;  %v872_v0 = vmax.f32 %v703_v60, 0.0  ;;  %v904_v1 = vmax.f32 %v831_v61, 0.0 }
 0x186   : > { %v945_v2 = vmul.f32 %v2432_v41, %v874_v58  ;;  %v977_v3 = vmul.f32 %v2432_v41, %v906_v59  ;;  %v1015_v6 = vadd.f32 %v2439_v57, %v944_v55  ;;  %v1047_v7 = vadd.f32 %v2439_v57, %v976_v56 }
 0x187   : > { %v943_v4 = vmul.f32 %v2432_v41, %v872_v0  ;;  %v975_v5 = vmul.f32 %v2432_v41, %v904_v1  ;;  %v1013_v10 = vadd.f32 %v2439_v57, %v942_v62  ;;  %v1045_v11 = vadd.f32 %v2439_v57, %v974_v63 }
 0x188   : > { %v1016_v8 = vadd.f32 %v2439_v57, %v945_v2  ;;  %v1048_v9 = vadd.f32 %v2439_v57, %v977_v3 }
 0x189   : > { %v1014_v41 = vadd.f32 %v2439_v57, %v943_v4  ;;  %v1046_v12 = vadd.f32 %v2439_v57, %v975_v5 }
 0x18a   : > { %v1732_v13 = vpack.c.bf16 %v1016_v8, %v1015_v6  ;;  %v1812_v14 = vpack.c.bf16 %v1048_v9, %v1047_v7 }
 0x18b   : > { %v1727_v15 = vpack.c.bf16 %v1014_v41, %v1013_v10  ;;  %v1807_v16 = vpack.c.bf16 %v1046_v12, %v1045_v11 }
 0x18c   : > { %1828 = vst [vmem:[%s2457_s9 + $0x78] sm:$0xff] %v1732_v13   ;;  %1844 = vst [vmem:[%s2457_s9 + $0xf8] sm:$0xff] %v1812_v14  }
 0x18d   : > { %1827 = vst [vmem:[%s2457_s9 + $0x70] sm:$0xff] %v1727_v15   ;;  %1843 = vst [vmem:[%s2457_s9 + $0xf0] sm:$0xff] %v1807_v16  }
 0x18e   : > { %2153 = shalt.err (!%p2150_p7)
}
 0x18f   : > { %s2154_s5 = scalar_lea.hbm %s2604_s7, 4096  ;;  %s2158_s23 = scalar_lea.hbm %s2657_s4, 28672 }
 0x190   : > { %p2155_p9 = scmp.ne.s32.totalorder %s2604_s7, %s2154_s5  ;;  %p2159_p5 = scmp.lt.u32.totalorder %s2604_s7, %s2657_s4 }
 0x191   : > { %p2160_p10 = scmp.lt.u32.totalorder %s2158_s23, %s2154_s5  ;;  %p2162_p4 = scmp.lt.u32.totalorder %s2154_s5, %s2604_s7 }
 0x192   : > { %p2156_p1 = pnand %p2155_p9, %p2330_p12 }
 0x193   : > { %p2161_p2 = por %p2160_p10, %p2159_p5 }
 0x194   : > { %p2157_p0 = pneg %p2156_p1 }
 0x195   : > { %p2163_p6 = por %p2162_p4, %p2161_p2 }
 0x197   : > { %p2164_p8 = pnand %p2163_p6, %p2157_p0 }
 0x199   : > { %2167 = shalt.err (!%p2164_p8)
}
 0x19a   : > { %s2217_s9 = smov 64   ;;  %s2218_s28 = smov 4  }
 0x19b   : > { %1987 = dma.vmem_to_hbm [thread:$0]  (%p2330_p12), %s2606_s10, 4096, %s2604_s7, %s1370_s26, %s2217_s9, %s2217_s9, %s2218_s28  }
 0x19c PF: > { %p2004_p11 = scmp.ge.s32.totalorder %s2210_s18, 2  ;;  %s1398_s19 = sand.u32 1, %s2198_s15  }
 0x19d   : > { %p2672_p13 = scmp.ne.s32.totalorder %s2662_s22, 0  ;;  %s1399_s6 = scalar_lea.sflag [#allocation4], %s1398_s19 }
 0x19f   : > { %p1998_p3 = pnand %p2004_p11, %p2672_p13 }
 0x1a1   : > { %2193 = dma.done.wait (!%p1998_p3), %s1399_s6, 4096  }
 0x1a2   : > { %2195 = vsyncadd (!%p1998_p3), %s1399_s6, 4294963200  ;;  %p18_p7 = scmp.ge.s32.totalorder %s2297_s27, 9   ;;  %s2673_s15 = smov %s2202_s16 }
 0x1a3   : > { %s2674_s16 = smov %s2206_s17  ;;  %s2675_s17 = smov %s2326_s24 }
 0x1a4   : > { %s2676_s18 = smov %s2297_s27  ;;  %20 = sbr.rel (!%p18_p7) target bundleno = 6 (0x6), region = 85 }
 0x1ab   :  { %1404 = vsyncpa [#allocation3], 1 }
 0x1ac   :  { %1406 = vsyncpa [#allocation3 + $0x1], 1 }
 0x1ad   :  { %1407 = vsyncpa [#allocation6], 1 }
 0x1ae   :  { %1408 = vsyncpa [#allocation4], 1 }
 0x1af   :  { %1410 = vsyncpa [#allocation4 + $0x1], 1 }

</bundles_post_ra>
